<compile_context>
chip_gen: v7x
topology: tpu7x:2x2x1
jax: 0.10.0
libtpu: 0.0.40
codegen_flags: <defaults>
</compile_context>

<pallas_src>
import functools

import jax
import jax.numpy as jnp
from jax import lax
from jax.experimental import pallas as pl
from jax.experimental.pallas import tpu as pltpu


def _ce_kernel(logits_ref, tgt_ref, nll_ref, *, num_classes, unroll_classes):
    # logits_ref: (C, tile_rows, 128)   tgt_ref: (tile_rows, 128) int32
    # nll_ref: (tile_rows, 128) f32 accumulator, resident per split.

    # Zero the per-split accumulator on the first inner grid step.
    @pl.when((pl.program_id(1) == 0) & (pl.program_id(2) == 0))
    def _init():
        nll_ref[...] = jnp.zeros_like(nll_ref)

    t = tgt_ref[...]                                      # (tile_rows, 128) int32
    valid = (t >= 0) & (t < num_classes)                  # ignore_index semantics

    def xc(cls):
        # One class-plane of logits, lane-dense over pixels.
        return logits_ref[cls].astype(jnp.float32)        # (tile_rows, 128)

    if unroll_classes:
        # Pass 1 (fused): running max over classes + gather of the target logit.
        v0 = xc(0)
        m = v0
        x_t = jnp.where(t == 0, v0, 0.0)
        for cls in range(1, num_classes):
            v = xc(cls)
            m = jnp.maximum(m, v)
            x_t = jnp.where(t == cls, v, x_t)
        # Pass 2: sum of exp (EUP exp + VPU adds).
        s = jnp.exp(xc(0) - m)
        for cls in range(1, num_classes):
            s = s + jnp.exp(xc(cls) - m)
    else:
        # Large class counts: bounded code size via fori_loop + dynamic ref index.
        v0 = xc(0)

        def pass1(cls, carry):
            m_c, xt_c = carry
            v = xc(cls)
            return jnp.maximum(m_c, v), jnp.where(t == cls, v, xt_c)

        m, x_t = lax.fori_loop(1, num_classes, pass1,
                               (v0, jnp.where(t == 0, v0, 0.0)), unroll=4)

        def pass2(cls, s_c):
            return s_c + jnp.exp(xc(cls) - m)

        s = lax.fori_loop(1, num_classes, pass2, jnp.exp(xc(0) - m), unroll=4)

    lse = jnp.log(s) + m                                  # (tile_rows, 128)

    # -log_softmax at the target class. Out-of-range targets (padding id C,
    # torch's default ignore_index=-100, garbage rows of a partial last tile)
    # contribute exactly 0; `where` (not multiply) blocks inf/NaN leakage.
    nll_ref[...] += jnp.where(valid, lse - x_t, 0.0)


def cross_entropy_loss_2d(outputs, targets, *, tile_pixels=131072, num_splits=None):
    """outputs: (N, C, H, W) float logits; targets: (N, H, W) int class ids.

    Returns scalar f32 == torch.nn.NLLLoss()(log_softmax(outputs, dim=1), targets)
    (reduction='mean', weight=None; targets outside [0, C) are ignored, matching
    torch's default ignore_index handling). If every target is ignored the result
    is 0/0 = NaN, matching torch.
    """
    # TODO(synk): optional per-class `weight` of NLLLoss is not implemented (module default weight=None is).
    n, c, h, w = outputs.shape
    hw = h * w
    lanes = 128
    itemsize = jnp.dtype(outputs.dtype).itemsize
    sub_align = 8 if itemsize >= 4 else 16                # bf16 packs 16 rows/vreg

    # ---- generation-aware VMEM budget -------------------------------------
    try:
        vmem_cap = int(pltpu.get_tpu_info().vmem_capacity_bytes)
    except Exception:
        vmem_cap = 64 * 1024 * 1024                       # conservative (v7x)
    vmem_limit = min((vmem_cap * 5) // 8, 64 * 1024 * 1024)
    # Double-buffered logits block (+targets +accumulator) must fit the limit.
    budget_rows = max(sub_align, (vmem_limit // 4) // (c * lanes * itemsize))

    # ---- TensorCore split (only helps on dual-TC chips, e.g. v7x) ---------
    if num_splits is None:
        try:
            kind = jax.devices()[0].device_kind.lower()
        except Exception:
            kind = ""
        num_splits = 2 if ("v7" in kind or "7x" in kind) else 1

    # Valid-pixel count (mean denominator) done in the wrapper: tiny reduction.
    tgt0 = targets.astype(jnp.int32)
    cnt = jnp.sum(((tgt0 >= 0) & (tgt0 < c)).astype(jnp.float32))

    # ---- lane-dense layout: pixels on the 128-lane axis --------------------
    hw_rows = pl.cdiv(hw, lanes)
    hw_lanes_pad = hw_rows * lanes

    logits = outputs.reshape(n, c, hw)
    tgt = tgt0.reshape(n, hw)
    if hw_lanes_pad != hw:
        # Only when H*W isn't a multiple of 128; otherwise logits are never copied.
        logits = jnp.pad(logits, ((0, 0), (0, 0), (0, hw_lanes_pad - hw)))
        tgt = jnp.pad(tgt, ((0, 0), (0, hw_lanes_pad - hw)), constant_values=c)
    logits = logits.reshape(n, c, hw_rows, lanes)         # free (contiguous)
    tgt = tgt.reshape(n, hw_rows, lanes)

    # ---- tile size ----------------------------------------------------------
    tile_rows = min(max(sub_align, tile_pixels // lanes), budget_rows, hw_rows)
    if tile_rows < hw_rows:
        tile_rows = max(sub_align, (tile_rows // sub_align) * sub_align)
    else:
        tile_rows = hw_rows                               # full dim: always legal
    tiles_per_n = pl.cdiv(hw_rows, tile_rows)

    # ---- choose how to split across TensorCores ----------------------------
    split_over_n = False
    if num_splits > 1 and n % num_splits == 0:
        split_over_n = True
    elif num_splits > 1:
        # Shrink tile_rows (8/16-aligned) until the tile count divides evenly,
        # instead of silently leaving one core idle.
        tr = (min(tile_rows, hw_rows) // sub_align) * sub_align
        while tr >= sub_align and (pl.cdiv(hw_rows, tr) % num_splits) != 0:
            tr -= sub_align
        if tr >= sub_align and (pl.cdiv(hw_rows, tr) % num_splits) == 0:
            tile_rows = tr
            tiles_per_n = pl.cdiv(hw_rows, tile_rows)
        else:
            num_splits = 1

    # Pad ONLY the tiny targets array to a whole number of row tiles; the logits'
    # ragged last block is read as a partial block (garbage rows masked by id C).
    hw_rows_pad = tiles_per_n * tile_rows
    if hw_rows_pad != hw_rows:
        tgt = jnp.pad(tgt, ((0, 0), (0, hw_rows_pad - hw_rows), (0, 0)),
                      constant_values=c)

    if num_splits > 1 and split_over_n:
        n_per = n // num_splits
        grid = (num_splits, n_per, tiles_per_n)
        n_of = lambda p, i: p * n_per + i
        r_of = lambda p, j: j
    elif num_splits > 1:
        t_per = tiles_per_n // num_splits
        grid = (num_splits, n, t_per)
        n_of = lambda p, i: i
        r_of = lambda p, j: p * t_per + j
    else:
        num_splits = 1
        grid = (1, n, tiles_per_n)
        n_of = lambda p, i: i
        r_of = lambda p, j: j

    logits_spec = pl.BlockSpec(
        (None, c, tile_rows, lanes), lambda p, i, j: (n_of(p, i), 0, r_of(p, j), 0))
    tgt_spec = pl.BlockSpec(
        (None, tile_rows, lanes), lambda p, i, j: (n_of(p, i), r_of(p, j), 0))
    acc_spec = pl.BlockSpec(
        (None, tile_rows, lanes), lambda p, i, j: (p, 0, 0))

    kernel = functools.partial(_ce_kernel, num_classes=c,
                               unroll_classes=(c <= 32))

    cost = pl.CostEstimate(
        flops=int(5 * n * c * hw),
        transcendentals=int(n * c * hw),
        bytes_accessed=int(n * c * hw * itemsize + n * hw * 4
                           + num_splits * tile_rows * lanes * 4),
    )

    nll_parts = pl.pallas_call(
        kernel,
        out_shape=jax.ShapeDtypeStruct((num_splits, tile_rows, lanes), jnp.float32),
        grid_spec=pltpu.PrefetchScalarGridSpec(
            num_scalar_prefetch=0,
            grid=grid,
            in_specs=[logits_spec, tgt_spec],
            out_specs=acc_spec,
        ),
        compiler_params=pltpu.CompilerParams(
            dimension_semantics=("parallel", "arbitrary", "arbitrary"),
            vmem_limit_bytes=int(vmem_limit),
        ),
        cost_estimate=cost,
    )(logits, tgt)

    # Tiny final reduction (a few KB) in XLA: mean over non-ignored targets.
    return jnp.sum(nll_parts) / cnt


def _reference(outputs, targets):
    # Pure-JAX reference: mean over pixels of -log_softmax(outputs)[n, target, h, w].
    logp = jax.nn.log_softmax(outputs.astype(jnp.float32), axis=1)  # (N, C, H, W)
    picked = jnp.take_along_axis(logp, targets[:, None, :, :].astype(jnp.int32), axis=1)
    return -jnp.mean(picked)


if __name__ == "__main__":
    key = jax.random.PRNGKey(0)
    k1, k2 = jax.random.split(key)

    N, C, H, W = 2, 4, 16, 16
    outputs = jax.random.normal(k1, (N, C, H, W), dtype=jnp.float32)
    targets = jax.random.randint(k2, (N, H, W), 0, C, dtype=jnp.int32)

    loss = cross_entropy_loss_2d(outputs, targets)
    jax.block_until_ready(loss)

    ref = _reference(outputs, targets)
    assert jnp.allclose(loss, ref, rtol=1e-5, atol=1e-5), (loss, ref)

    print("KERNEL_OK")
</pallas_src>

<mosaic_0001>
module attributes {stable_mosaic.version = 11 : i64} {
  func.func @_ce_kernel(%arg0: i32, %arg1: i32, %arg2: i32, %arg3: memref<1x4x2x128xf32, #tpu.memory_space<vmem>>, %arg4: memref<1x2x128xi32, #tpu.memory_space<vmem>>, %arg5: memref<1x2x128xf32, #tpu.memory_space<vmem>>) attributes {dimension_semantics = [#tpu.dimension_semantics<parallel>, #tpu.dimension_semantics<arbitrary>, #tpu.dimension_semantics<arbitrary>], iteration_bounds = array<i64: 1, 2, 1>, scalar_prefetch = 0 : i64, scratch_operands = 0 : i64, tpu.core_type = #tpu.core_type<tc>, window_params = [{transform_indices = @transform_0, window_bounds = array<i64: 1, 4, 2, 128>}, {transform_indices = @transform_1, window_bounds = array<i64: 1, 2, 128>}, {transform_indices = @transform_2, window_bounds = array<i64: 1, 2, 128>}]} {
    %c0_i32 = arith.constant 0 : i32
    %0 = arith.cmpi eq, %arg1, %c0_i32 : i32
    %c0_i32_0 = arith.constant 0 : i32
    %1 = arith.cmpi eq, %arg2, %c0_i32_0 : i32
    %2 = arith.andi %0, %1 : i1
    %3 = arith.extui %2 : i1 to i32
    %c0_i32_1 = arith.constant 0 : i32
    %4 = arith.cmpi ne, %3, %c0_i32_1 : i32
    scf.if %4 {
      %cst_42 = arith.constant 0.000000e+00 : f32
      %66 = vector.broadcast %cst_42 : f32 to vector<2x128xf32>
      %c0_43 = arith.constant 0 : index
      %c0_44 = arith.constant 0 : index
      %c0_45 = arith.constant 0 : index
      %67 = vector.load %arg5[%c0_43, %c0_44, %c0_45] : memref<1x2x128xf32, #tpu.memory_space<vmem>>, vector<1x2x128xf32>
      %68 = vector.shape_cast %67 : vector<1x2x128xf32> to vector<2x128xf32>
      %69 = vector.shape_cast %66 : vector<2x128xf32> to vector<1x2x128xf32>
      tpu.vector_store %arg5[%c0_43, %c0_44, %c0_45], %69 {strides = array<i32>} : memref<1x2x128xf32, #tpu.memory_space<vmem>>, vector<1x2x128xf32>,
    } else {
    }
    %c0 = arith.constant 0 : index
    %c0_2 = arith.constant 0 : index
    %c0_3 = arith.constant 0 : index
    %5 = vector.load %arg4[%c0, %c0_2, %c0_3] : memref<1x2x128xi32, #tpu.memory_space<vmem>>, vector<1x2x128xi32>
    %6 = vector.shape_cast %5 : vector<1x2x128xi32> to vector<2x128xi32>
    %c0_i32_4 = arith.constant 0 : i32
    %7 = vector.broadcast %c0_i32_4 : i32 to vector<2x128xi32>
    %8 = arith.cmpi sge, %6, %7 : vector<2x128xi32>
    %c4_i32 = arith.constant 4 : i32
    %9 = vector.broadcast %c4_i32 : i32 to vector<2x128xi32>
    %10 = arith.cmpi slt, %6, %9 : vector<2x128xi32>
    %11 = arith.andi %8, %10 : vector<2x128xi1>
    %c0_5 = arith.constant 0 : index
    %c0_6 = arith.constant 0 : index
    %c0_7 = arith.constant 0 : index
    %c0_8 = arith.constant 0 : index
    %12 = vector.load %arg3[%c0_5, %c0_6, %c0_7, %c0_8] : memref<1x4x2x128xf32, #tpu.memory_space<vmem>>, vector<1x1x2x128xf32>
    %13 = vector.shape_cast %12 : vector<1x1x2x128xf32> to vector<2x128xf32>
    %c0_i32_9 = arith.constant 0 : i32
    %14 = vector.broadcast %c0_i32_9 : i32 to vector<2x128xi32>
    %15 = arith.cmpi eq, %6, %14 : vector<2x128xi32>
    %cst = arith.constant 0.000000e+00 : f32
    %16 = vector.broadcast %cst : f32 to vector<2x128xf32>
    %17 = arith.select %15, %13, %16 : vector<2x128xi1>, vector<2x128xf32>
    %c0_10 = arith.constant 0 : index
    %c1 = arith.constant 1 : index
    %c0_11 = arith.constant 0 : index
    %c0_12 = arith.constant 0 : index
    %18 = vector.load %arg3[%c0_10, %c1, %c0_11, %c0_12] : memref<1x4x2x128xf32, #tpu.memory_space<vmem>>, vector<1x1x2x128xf32>
    %19 = vector.shape_cast %18 : vector<1x1x2x128xf32> to vector<2x128xf32>
    %20 = arith.maximumf %13, %19 : vector<2x128xf32>
    %c1_i32 = arith.constant 1 : i32
    %21 = vector.broadcast %c1_i32 : i32 to vector<2x128xi32>
    %22 = arith.cmpi eq, %6, %21 : vector<2x128xi32>
    %23 = arith.select %22, %19, %17 : vector<2x128xi1>, vector<2x128xf32>
    %c0_13 = arith.constant 0 : index
    %c2 = arith.constant 2 : index
    %c0_14 = arith.constant 0 : index
    %c0_15 = arith.constant 0 : index
    %24 = vector.load %arg3[%c0_13, %c2, %c0_14, %c0_15] : memref<1x4x2x128xf32, #tpu.memory_space<vmem>>, vector<1x1x2x128xf32>
    %25 = vector.shape_cast %24 : vector<1x1x2x128xf32> to vector<2x128xf32>
    %26 = arith.maximumf %20, %25 : vector<2x128xf32>
    %c2_i32 = arith.constant 2 : i32
    %27 = vector.broadcast %c2_i32 : i32 to vector<2x128xi32>
    %28 = arith.cmpi eq, %6, %27 : vector<2x128xi32>
    %29 = arith.select %28, %25, %23 : vector<2x128xi1>, vector<2x128xf32>
    %c0_16 = arith.constant 0 : index
    %c3 = arith.constant 3 : index
    %c0_17 = arith.constant 0 : index
    %c0_18 = arith.constant 0 : index
    %30 = vector.load %arg3[%c0_16, %c3, %c0_17, %c0_18] : memref<1x4x2x128xf32, #tpu.memory_space<vmem>>, vector<1x1x2x128xf32>
    %31 = vector.shape_cast %30 : vector<1x1x2x128xf32> to vector<2x128xf32>
    %32 = arith.maximumf %26, %31 : vector<2x128xf32>
    %c3_i32 = arith.constant 3 : i32
    %33 = vector.broadcast %c3_i32 : i32 to vector<2x128xi32>
    %34 = arith.cmpi eq, %6, %33 : vector<2x128xi32>
    %35 = arith.select %34, %31, %29 : vector<2x128xi1>, vector<2x128xf32>
    %c0_19 = arith.constant 0 : index
    %c0_20 = arith.constant 0 : index
    %c0_21 = arith.constant 0 : index
    %c0_22 = arith.constant 0 : index
    %36 = vector.load %arg3[%c0_19, %c0_20, %c0_21, %c0_22] : memref<1x4x2x128xf32, #tpu.memory_space<vmem>>, vector<1x1x2x128xf32>
    %37 = vector.shape_cast %36 : vector<1x1x2x128xf32> to vector<2x128xf32>
    %38 = arith.subf %37, %32 : vector<2x128xf32>
    %39 = math.exp %38 : vector<2x128xf32>
    %c0_23 = arith.constant 0 : index
    %c1_24 = arith.constant 1 : index
    %c0_25 = arith.constant 0 : index
    %c0_26 = arith.constant 0 : index
    %40 = vector.load %arg3[%c0_23, %c1_24, %c0_25, %c0_26] : memref<1x4x2x128xf32, #tpu.memory_space<vmem>>, vector<1x1x2x128xf32>
    %41 = vector.shape_cast %40 : vector<1x1x2x128xf32> to vector<2x128xf32>
    %42 = arith.subf %41, %32 : vector<2x128xf32>
    %43 = math.exp %42 : vector<2x128xf32>
    %44 = arith.addf %39, %43 : vector<2x128xf32>
    %c0_27 = arith.constant 0 : index
    %c2_28 = arith.constant 2 : index
    %c0_29 = arith.constant 0 : index
    %c0_30 = arith.constant 0 : index
    %45 = vector.load %arg3[%c0_27, %c2_28, %c0_29, %c0_30] : memref<1x4x2x128xf32, #tpu.memory_space<vmem>>, vector<1x1x2x128xf32>
    %46 = vector.shape_cast %45 : vector<1x1x2x128xf32> to vector<2x128xf32>
    %47 = arith.subf %46, %32 : vector<2x128xf32>
    %48 = math.exp %47 : vector<2x128xf32>
    %49 = arith.addf %44, %48 : vector<2x128xf32>
    %c0_31 = arith.constant 0 : index
    %c3_32 = arith.constant 3 : index
    %c0_33 = arith.constant 0 : index
    %c0_34 = arith.constant 0 : index
    %50 = vector.load %arg3[%c0_31, %c3_32, %c0_33, %c0_34] : memref<1x4x2x128xf32, #tpu.memory_space<vmem>>, vector<1x1x2x128xf32>
    %51 = vector.shape_cast %50 : vector<1x1x2x128xf32> to vector<2x128xf32>
    %52 = arith.subf %51, %32 : vector<2x128xf32>
    %53 = math.exp %52 : vector<2x128xf32>
    %54 = arith.addf %49, %53 : vector<2x128xf32>
    %55 = math.log %54 : vector<2x128xf32>
    %56 = arith.addf %55, %32 : vector<2x128xf32>
    %c0_35 = arith.constant 0 : index
    %c0_36 = arith.constant 0 : index
    %c0_37 = arith.constant 0 : index
    %57 = vector.load %arg5[%c0_35, %c0_36, %c0_37] : memref<1x2x128xf32, #tpu.memory_space<vmem>>, vector<1x2x128xf32>
    %58 = vector.shape_cast %57 : vector<1x2x128xf32> to vector<2x128xf32>
    %59 = arith.subf %56, %35 : vector<2x128xf32>
    %cst_38 = arith.constant 0.000000e+00 : f32
    %60 = vector.broadcast %cst_38 : f32 to vector<2x128xf32>
    %61 = arith.select %11, %59, %60 : vector<2x128xi1>, vector<2x128xf32>
    %62 = arith.addf %58, %61 : vector<2x128xf32>
    %c0_39 = arith.constant 0 : index
    %c0_40 = arith.constant 0 : index
    %c0_41 = arith.constant 0 : index
    %63 = vector.load %arg5[%c0_39, %c0_40, %c0_41] : memref<1x2x128xf32, #tpu.memory_space<vmem>>, vector<1x2x128xf32>
    %64 = vector.shape_cast %63 : vector<1x2x128xf32> to vector<2x128xf32>
    %65 = vector.shape_cast %62 : vector<2x128xf32> to vector<1x2x128xf32>
    tpu.vector_store %arg5[%c0_39, %c0_40, %c0_41], %65 {strides = array<i32>} : memref<1x2x128xf32, #tpu.memory_space<vmem>>, vector<1x2x128xf32>,
    return
  }
  func.func @transform_0(%arg0: i32, %arg1: i32, %arg2: i32) -> (i32, i32, i32, i32) {
    %c0_i32 = arith.constant 0 : i32
    %c0_i32_0 = arith.constant 0 : i32
    %c0_i32_1 = arith.constant 0 : i32
    return %arg1, %c0_i32, %arg2, %c0_i32_0 : i32, i32, i32, i32
  }
  func.func @transform_1(%arg0: i32, %arg1: i32, %arg2: i32) -> (i32, i32, i32) {
    %c0_i32 = arith.constant 0 : i32
    %c0_i32_0 = arith.constant 0 : i32
    return %arg1, %arg2, %c0_i32 : i32, i32, i32
  }
  func.func @transform_2(%arg0: i32, %arg1: i32, %arg2: i32) -> (i32, i32, i32) {
    %c0_i32 = arith.constant 0 : i32
    %c0_i32_0 = arith.constant 0 : i32
    %c0_i32_1 = arith.constant 0 : i32
    return %arg0, %c0_i32, %c0_i32_0 : i32, i32, i32
  }
}

</mosaic_0001>

<bundles_post_ra>
// kernel: tpu_custom_call.1
= control target key start
LH: loop header
LB: loop body
LE: loop exit
PB: predicated region body
PF: predicated region fallthrough
CT: control target
= control target key end

     0   :  { %7 = vsyncpa [#allocation3], 0  ;;  %s829_s0 = inlined_call_operand.hbm [shape: f32[2,4,2,128], index: 0, kind: input, shape index: {}]   ;;  %s830_s1 = inlined_call_operand.hbm [shape: s32[2,2,128], index: 1, kind: input, shape index: {}]   ;;  %s831_s2 = inlined_call_operand.hbm [shape: f32[1,2,128], index: 2, kind: output, shape index: {}]  }
   0x1   :  { %9 = vsyncpa [#allocation3 + $0x1], 0 }
   0x2   :  { %10 = vsyncpa [#allocation6], 0 }
   0x3   :  { %12 = vsyncpa [#allocation6 + $0x1], 0 }
   0x4   :  { %13 = vsyncpa [#allocation4], 0  ;;  %s636_s9 = smov 0   ;;  %s638_s10 = smov 0  }
   0x5   :  { %s640_s11 = smov 0   ;;  %s642_s12 = smov 0  }
   0x6   :  { %s644_s13 = smov 0   ;;  %s646_s14 = smov 0  }
   0x7 LB: > { %s368_s15 = sadd.s32 4294967295, %s613_s14   ;;  %s34_s16 = sadd.s32 1, %s609_s13  ;;  %s613_s14 = sphi %s646_s14, %s19_s14   ;;  %s609_s13 = sphi %s644_s13, %s844_s13   ;;  %s605_s12 = sphi %s642_s12, %s843_s12   ;;  %s601_s11 = sphi %s640_s11, %s842_s11   ;;  %s597_s10 = sphi %s638_s10, %s841_s10   ;;  %s593_s9 = sphi %s636_s9, %s840_s9  }
   0x8   : > { %p36_p0 = scmp.ge.s32.totalorder %s34_s16, 2  ;;  %s47_s17 = sadd.s32 1, %s601_s11 }
   0x9   : > { %p54_p1 = scmp.ne.s32.totalorder %s601_s11, %s597_s10  ;;  %p55_p2 = scmp.eq.s32.totalorder %s613_s14, 0 }
   0xa   : > { %s846_s16 = smov (%p36_p0, %s34_s16), 0  ;;  %p60_p4 = scmp.ne.s32.totalorder %s597_s10, %s593_s9 }
   0xb   : > { %p672_p3 = por %p55_p2, %p54_p1  ;;  %s42_s19 = ssub.s32 %s609_s13, %s846_s16 }
   0xc   : > { %p61_p5 = scmp.eq.s32.totalorder %s368_s15, 0  ;;  %p45_p6 = scmp.eq.s32.totalorder %s42_s19, 0 }
   0xd   : > { %p404_p8 = scmp.lt.s32.totalorder %s613_s14, 2  ;;  %s690_s22 = sand.u32 1, %s601_s11  }
   0xe   : > { %p681_p7 = por %p61_p5, %p60_p4  ;;  %s387_s23 = sshll.u32 %s609_s13, 7 }
   0xf   : > { %s687_s21 = scalar_select %p45_p6, %s601_s11, %s47_s17  }
  0x10   : > { %s834_s20 = scalar_select %p681_p7, 1, 0 }
  0x11   : > { %s371_s24 = sshll.u32 %s690_s22, 3  ;;  %s697_s27 = scalar_lea.hbm %s829_s0, %s387_s23 }
  0x12   : > { %s142_s28 = scalar_lea.vmem [#allocation2], %s371_s24  ;;  %p701_p9 = pnand %p404_p8, %p672_p3 }
  0x13   : > { %s150_s29 = sshll.u32 %s142_s28, 4  ;;  %s139_s3 = scalar_lea.sflag [#allocation3], %s690_s22  ;;  %s705_s29 = int_to_ptr.vmem [resolvable:$true] %s150_s29 }
  0x14   : > { %s469_s4 = scalar_lea.hbm %s697_s27, 128  ;;  %p471_p11 = pneg %p701_p9 }
  0x15   : > { %p470_p10 = scmp.ne.s32.totalorder %s697_s27, %s469_s4  ;;  %s474_s7 = scalar_lea.hbm %s829_s0, 256 }
  0x16   : > { %p475_p0 = scmp.lt.u32.totalorder %s697_s27, %s829_s0  ;;  %p476_p1 = scmp.lt.u32.totalorder %s474_s7, %s469_s4 }
  0x17   : > { %p472_p12 = pnand %p471_p11, %p470_p10  ;;  %p478_p3 = scmp.lt.u32.totalorder %s469_s4, %s697_s27 }
  0x18   : > { %p477_p2 = por %p476_p1, %p475_p0 }
  0x19   : > { %p473_p13 = pneg %p472_p12 }
  0x1a   : > { %p479_p4 = por %p478_p3, %p477_p2 }
  0x1c   : > { %p480_p5 = pnand %p479_p4, %p473_p13 }
  0x1e   : > { %483 = shalt.err (!%p480_p5)
}
  0x1f   : > { %s484_s17 = scalar_lea.vmem %s705_s29, 128  ;;  %s615_s18 = smov [#allocation2]  }
  0x20   : > { %p485_p6 = scmp.ne.s32.totalorder %s705_s29, %s484_s17  ;;  %s489_s19 = sshll.u32 %s615_s18, 4  ;;  %s490_s19 = int_to_ptr.vmem [resolvable:$false] %s489_s19 }
  0x21   : > { %s491_s23 = scalar_lea.vmem %s490_s19, 256  ;;  %p492_p12 = scmp.lt.s32.totalorder %s705_s29, %s490_s19 }
  0x22   : > { %p487_p8 = pnand %p485_p6, %p471_p11  ;;  %p493_p0 = scmp.lt.s32.totalorder %s491_s23, %s484_s17 }
  0x24   : > { %p488_p10 = pneg %p487_p8  ;;  %p494_p1 = por %p493_p0, %p492_p12 }
  0x26   : > { %p495_p2 = pnand %p494_p1, %p488_p10 }
  0x28   : > { %498 = shalt.err (!%p495_p2)
}
  0x29   : > { %s616_s24 = smov 32   ;;  %s617_s25 = smov 2  }
  0x2a   : > { %400 = dma.hbm_to_vmem [thread:$0]  (!%p701_p9), %s697_s27, 128, %s705_s29, %s139_s3, %s616_s24, %s616_s24, %s617_s25  }
  0x2b   : > { %p376_p13 = scmp.ge.s32.totalorder %s613_s14, 1  ;;  %p177_p3 = scmp.lt.s32.totalorder %s613_s14, 3 }
  0x2c   : > { %s374_s26 = sshll.u32 %s690_s22, 1  ;;  %s375_s4 = sshll.u32 %s609_s13, 5 }
  0x2d   : > { %p738_p4 = pnand %p376_p13, %p177_p3  ;;  %s164_s5 = scalar_lea.vmem [#allocation5], %s374_s26 }
  0x2e   : > { %s172_s6 = sshll.u32 %s164_s5, 4  ;;  %s746_s9 = scalar_lea.hbm %s830_s1, %s375_s4  ;;  %s173_s6 = int_to_ptr.vmem [resolvable:$true] %s172_s6 }
  0x2f   : > { %s836_s28 = scalar_select %p738_p4, 1, 0 }
  0x30   : > { %s161_s27 = scalar_lea.sflag [#allocation6], %s690_s22  ;;  %s499_s29 = scalar_lea.hbm %s746_s9, 32 }
  0x31   : > { %p500_p5 = scmp.ne.s32.totalorder %s746_s9, %s499_s29  ;;  %s504_s18 = scalar_lea.hbm %s830_s1, 64 }
  0x32   : > { %p505_p10 = scmp.lt.u32.totalorder %s746_s9, %s830_s1  ;;  %p506_p12 = scmp.lt.u32.totalorder %s504_s18, %s499_s29 }
  0x33   : > { %p502_p6 = pnand %p500_p5, %p471_p11  ;;  %p508_p1 = scmp.lt.u32.totalorder %s499_s29, %s746_s9 }
  0x34   : > { %p507_p0 = por %p506_p12, %p505_p10 }
  0x35   : > { %p503_p8 = pneg %p502_p6 }
  0x36   : > { %p509_p2 = por %p508_p1, %p507_p0 }
  0x38   : > { %p510_p13 = pnand %p509_p2, %p503_p8 }
  0x3a   : > { %513 = shalt.err (!%p510_p13)
}
  0x3b   : > { %s514_s22 = scalar_lea.vmem %s173_s6, 32  ;;  %s618_s24 = smov [#allocation5]  }
  0x3c   : > { %p515_p3 = scmp.ne.s32.totalorder %s173_s6, %s514_s22  ;;  %s519_s25 = sshll.u32 %s618_s24, 4  ;;  %s520_s25 = int_to_ptr.vmem [resolvable:$false] %s519_s25 }
  0x3d   : > { %s521_s26 = scalar_lea.vmem %s520_s25, 64  ;;  %p522_p7 = scmp.lt.s32.totalorder %s173_s6, %s520_s25 }
  0x3e   : > { %p517_p5 = pnand %p515_p3, %p471_p11  ;;  %p523_p4 = scmp.lt.s32.totalorder %s521_s26, %s514_s22 }
  0x40   : > { %p518_p6 = pneg %p517_p5  ;;  %p524_p10 = por %p523_p4, %p522_p7 }
  0x42   : > { %p525_p12 = pnand %p524_p10, %p518_p6 }
  0x44   : > { %528 = shalt.err (!%p525_p12)
}
  0x45   : > { %403 = dma.hbm_to_vmem [thread:$0]  (!%p701_p9), %s746_s9, 32, %s173_s6, %s161_s27  }
  0x46   : > { %p837_p8 = scmp.ne.s32.totalorder %s836_s28, 0 }
  0x47   : > { %s183_s4 = sand.u32 (!%p837_p8), 1, %s597_s10   ;;  %p838_p11 = scmp.ne.s32.totalorder (!%p837_p8), %s834_s20, 0 }
  0x48   : > { %181 = sbr.rel (%p837_p8) target bundleno = 156 (0x9c), region = 28  ;;  %s377_s5 = sshll.u32 (!%p837_p8), %s183_s4, 3 }
  0x49   : > { %s184_s7 = scalar_lea.sflag (!%p837_p8), [#allocation3], %s183_s4  ;;  %s187_s8 = scalar_lea.vmem (!%p837_p8), [#allocation2], %s377_s5 }
  0x4f   : > { %580 = dma.done.wait (%p838_p11), %s184_s7, 128  }
  0x50   : > { %582 = vsyncadd (%p838_p11), %s184_s7, 4294967168  ;;  %s378_s29 = sshll.u32 %s183_s4, 1  ;;  %s193_s3 = scalar_lea.sflag [#allocation6], %s183_s4 }
  0x51   : > { %s775_s30 = scalar_lea.vmem [#allocation5], %s378_s29 }
  0x52   : > { %584 = dma.done.wait (%p838_p11), %s193_s3, 32  }
  0x53   : > { %586 = vsyncadd (%p838_p11), %s193_s3, 4294967264  ;;  %p217_p7 = scmp.eq.s32.totalorder %s605_s12, 0 }
  0x54   : > { %v619_v0 = vmov (%p217_p7), 0.0  }
  0x55   : > { %222 = sbr.rel (!%p217_p7) target bundleno = 92 (0x5c), region = 40  ;;  %223 = vst [vmem:[#allocation7] sm:$0x3] (%p217_p7), %v619_v0 }
  0x5c PF: > { %v228_v1 = vld [vmem:[%s187_s8] sm:$0x3]  ;;  %v380_v2 = vld [vmem:[%s187_s8 + $0x2] sm:$0x3]  ;;  %v381_v4 = vld [vmem:[%s187_s8 + $0x4] sm:$0x3] }
  0x5d   : > { %v233_v3 = vmax.f32 %v228_v1, %v380_v2  ;;  %v382_v5 = vld [vmem:[%s187_s8 + $0x6] sm:$0x3]  ;;  %v224_v22 = vld [vmem:[%s775_s30] sm:$0x3]  ;;  %v264_v31 = vld [vmem:[#allocation7] sm:$0x3] }
  0x5e   : > { %vm229_vm0 = vcmp.eq.s32.totalorder %v224_v22, 0  ;;  %vm234_vm1 = vcmp.eq.s32.totalorder %v224_v22, 1  ;;  %vm239_vm2 = vcmp.eq.s32.totalorder %v224_v22, 2  ;;  %vm244_vm3 = vcmp.eq.s32.totalorder %v224_v22, 3  ;;  %s620_s12 = smov [#allocation7]   ;;  %p785_p9 = scmp.eq.s32.totalorder %s368_s15, 1 }
  0x5f   : > { %v238_v6 = vmax.f32 %v233_v3, %v381_v4  ;;  %v230_v24 = vsel %vm229_vm0, %v228_v1, 0.0  ;;  %vm225_vm4 = vcmp.ge.s32.totalorder %v224_v22, 0  ;;  %vm226_vm5 = vcmp.lt.s32.totalorder %v224_v22, 4  ;;  %s278_s20 = sshll.u32 %s620_s12, 4  ;;  %s279_s20 = int_to_ptr.vmem [resolvable:$true] %s278_s20 }
  0x60   : > { %v235_v25 = vsel %vm234_vm1, %v380_v2, %v230_v24  ;;  %vm227_vm6 = vmand %vm225_vm4, %vm226_vm5  ;;  %s529_s6 = scalar_lea.vmem %s279_s20, 32  ;;  %p536_p2 = scmp.lt.s32.totalorder %s279_s20, %s279_s20 }
  0x61   : > { %v243_v7 = vmax.f32 %v238_v6, %v382_v5  ;;  %v240_v26 = vsel %vm239_vm2, %v381_v4, %v235_v25  ;;  %p530_p4 = scmp.ne.s32.totalorder %s279_s20, %s529_s6  ;;  %p537_p13 = scmp.lt.s32.totalorder %s529_s6, %s529_s6 }
  0x62   : > { %v245_v29 = vsel %vm244_vm3, %v382_v5, %v240_v26 }
  0x63   : > { %v246_v8 = vsub.f32 %v228_v1, %v243_v7  ;;  %v249_v9 = vsub.f32 %v380_v2, %v243_v7  ;;  %v253_v10 = vsub.f32 %v381_v4, %v243_v7  ;;  %v257_v11 = vsub.f32 %v382_v5, %v243_v7  ;;  %p531_p0 = pnand %p530_p4, %p785_p9  ;;  %p538_p3 = por %p537_p13, %p536_p2 }
  0x65   : > { %v247_v12 = vmul.f32 1.442695, %v246_v8  ;;  %v250_v13 = vmul.f32 1.442695, %v249_v9  ;;  %v254_v14 = vmul.f32 1.442695, %v253_v10  ;;  %p532_p1 = pneg %p531_p0 }
  0x66   : > { %v258_v15 = vmul.f32 1.442695, %v257_v11 }
  0x67   : > { %459 = vpow2.f32 %v247_v12  ;;  %p539_p5 = pnand %p538_p3, %p532_p1 }
  0x68   : > { %461 = vpow2.f32 %v250_v13 }
  0x69   : > { %463 = vpow2.f32 %v254_v14 }
  0x6a   : > { %465 = vpow2.f32 %v258_v15 }
  0x71   : > { %v460_v16 = vpop.eup %459 }
  0x72   : > { %v462_v17 = vpop.eup %461 }
  0x73   : > { %v464_v18 = vpop.eup %463  ;;  %v252_v19 = vadd.f32 %v462_v17, %v460_v16 }
  0x74   : > { %v466_v20 = vpop.eup %465 }
  0x75   : > { %v256_v21 = vadd.f32 %v464_v18, %v252_v19 }
  0x77   : > { %v260_v23 = vadd.f32 %v466_v20, %v256_v21 }
  0x79   : > { %467 = vlog2.f32 %v260_v23 }
  0x83   : > { %v468_v27 = vpop.eup %467 }
  0x84   : > { %v262_v28 = vmul.f32 0.6931472, %v468_v27 }
  0x86   : > { %v263_v30 = vadd.f32 %v262_v28, %v243_v7 }
  0x88   : > { %v265_v32 = vsub.f32 %v263_v30, %v245_v29 }
  0x8a   : > { %v266_v33 = vsel %vm227_vm6, %v265_v32, 0.0 }
  0x8b   : > { %v267_v34 = vadd.f32 %v266_v33, %v264_v31 }
  0x8d   : > { %268 = vst [vmem:[#allocation7] sm:$0x3] %v267_v34 }
  0x8e   : > { %542 = shalt.err (!%p539_p5)
}
  0x8f   : > { %s543_s15 = scalar_lea.hbm %s831_s2, 32 }
  0x90   : > { %p544_p6 = scmp.ne.s32.totalorder %s831_s2, %s543_s15  ;;  %p549_p8 = scmp.lt.u32.totalorder %s543_s15, %s831_s2 }
  0x92   : > { %p545_p10 = pnand %p544_p6, %p785_p9 }
  0x94   : > { %p546_p12 = pneg %p545_p10 }
  0x96   : > { %p551_p11 = pnand %p549_p8, %p546_p12 }
  0x98   : > { %554 = shalt.err (!%p551_p11)
}
  0x99   : > { %394 = dma.vmem_to_hbm [thread:$0]  (%p785_p9), %s279_s20, 32, %s831_s2, [#allocation4]  }
  0x9a   : > { %588 = dma.done.wait (%p785_p9), [#allocation4], 32  }
  0x9b   : > { %590 = vsyncadd (%p785_p9), [#allocation4], 4294967264 }
  0x9c PF: > { %s19_s14 = sadd.s32 1, %s613_s14   ;;  %s840_s9 = smov %s597_s10 }
  0x9d   : > { %p16_p7 = scmp.ge.s32.totalorder %s19_s14, 4   ;;  %s841_s10 = smov %s601_s11 }
  0x9e   : > { %s842_s11 = smov %s687_s21  ;;  %s843_s12 = smov %s609_s13 }
  0x9f   : > { %s844_s13 = smov %s846_s16  ;;  %18 = sbr.rel (!%p16_p7) target bundleno = 7 (0x7), region = 86 }
  0xa6   :  { %291 = vsyncpa [#allocation3], 1 }
  0xa7   :  { %293 = vsyncpa [#allocation3 + $0x1], 1 }
  0xa8   :  { %294 = vsyncpa [#allocation6], 1 }
  0xa9   :  { %296 = vsyncpa [#allocation6 + $0x1], 1 }
  0xaa   :  { %297 = vsyncpa [#allocation4], 1 }
  0xab   :  { %299 = vsyncpa [#allocation4 + $0x1], 1 }

</bundles_post_ra>
